<compile_context>
chip_gen: v5e
topology: v5e:2x2
jax: 0.10.0
libtpu: 0.0.40
codegen_flags: <defaults>
</compile_context>

<pallas_src>
import functools

import numpy as np

import jax
import jax.numpy as jnp
from jax import lax
from jax.experimental import pallas as pl
from jax.experimental.pallas import tpu as pltpu


def _wcs_loss_kernel(feat_ref, lab_ref, lab_t_ref, neg_lab_t_ref,
                     loss_ref, negsum_ref, t1_ref, *, class_num, n_valid, eps):
    inv_c = 1.0 / float(class_num)
    tiny = 1e-30   # log clamp; only ever hits entries the positive mask discards

    # ---------------- class-invariant precompute (once) ----------------
    # Ordered so at most ~3 N^2 f32 arrays are live at any point and only P
    # (plus the per-class L1 temp) survives into the class loop.
    f = feat_ref[...]                                            # [N, Dp]
    sq = jnp.sum(f * f, axis=1, keepdims=True)                   # [N, 1]
    f_n = f * lax.rsqrt(jnp.maximum(sq, eps * eps))              # row-normalized
    S = jnp.exp(lax.dot_general(f_n, f_n, (((1,), (1,)), ((), ())),
                                preferred_element_type=jnp.float32))  # exp(cos) [N,N]

    lab = lab_ref[...]                                           # [N, C]
    lab_t = lab_t_ref[...]                                       # [C, N]
    neg_lab_t = neg_lab_t_ref[...]                               # [C, N] (padded cols = 0)
    # Hamming distance exactly as in the module: two canonical [N,C]@[C,N]
    # MXU matmuls, no reductions / transposes on the XLU.
    D = (jnp.dot(lab, neg_lab_t, preferred_element_type=jnp.float32) +
         jnp.dot(1.0 - lab, lab_t, preferred_element_type=jnp.float32))   # [N, N]

    # Batched per-class negative sums: one [C,N]@[N,N] matmul replaces C
    # sequential [1,N] matvecs.  M = S*D is symmetric, so
    # negsum_all[i, c] = sum_{j not in class i, j valid} S[c, j] * D[c, j].
    negsum_ref[...] = jnp.dot(neg_lab_t, S * D,
                              preferred_element_type=jnp.float32)          # [C, N]

    P = S * (1.0 - D * inv_c)          # pos_dis (class-invariant), symmetric, >= 0
    # Batched t2_i = sum_{b,c in pos_i} log(pos_dis[b,c]);  logP dies before the loop.
    logP = jnp.log(jnp.maximum(P, tiny))                         # [N, N]
    u2 = jnp.dot(lab_t, logP, preferred_element_type=jnp.float32)          # [C, N]
    t2_all = jnp.sum(lab_t * u2, axis=1, keepdims=True)          # [C, 1]

    num_pos = jnp.sum(lab_t, axis=1, keepdims=True)              # [C, 1]
    size_all = (float(n_valid) - num_pos) + 1.0                  # num_neg + 1

    # ------------- per-class loop: only the log(neg_sum + P) term -------------
    def body(i, carry):
        pos_r = lab_t_ref[pl.ds(i, 1), :]                        # [1, N], exact {0,1}
        negsum_r = negsum_ref[pl.ds(i, 1), :]                    # [1, N]
        # arg[b, c] = negsum_i[c] + P[b, c]; the pos x pos masked sum below equals
        # the row-oriented reference sum because P (and hence the selected block)
        # is symmetric -- do not break this symmetry when refactoring/tiling.
        L1 = jnp.log(jnp.maximum(negsum_r + P, tiny))            # [N, N]
        u1 = jnp.dot(pos_r, L1, preferred_element_type=jnp.float32)        # [1, N]
        t1_ref[pl.ds(i, 1), :] = jnp.sum(u1 * pos_r, axis=1, keepdims=True)
        return carry

    lax.fori_loop(0, class_num, body, 0,
                  unroll=class_num if class_num <= 8 else 4)

    # ---------------- batched epilogue ----------------
    t1_all = t1_ref[...]                                         # [C, 1]
    denom = jnp.maximum(num_pos * num_pos, 1.0)
    # mean(log(den / (pos_dis * size))) = (t1 - t2) / num_pos^2 - log(size)
    contrib = jnp.where(num_pos > 0.0,
                        (t1_all - t2_all) / denom - jnp.log(size_all),
                        jnp.zeros_like(num_pos))                 # empty class -> skip
    loss_ref[...] = jnp.sum(contrib, keepdims=True)              # [1, 1]


def weighted_cosine_similarity_loss(features, labels, class_num, *, eps=1e-15):
    """features: [N, D] float32, labels: [N, C] float32 with exact {0,1} entries."""
    features = jnp.asarray(features, jnp.float32)
    labels = jnp.asarray(labels, jnp.float32)
    n, d = features.shape
    c = labels.shape[1]
    assert c == class_num

    # Pad D to the 128-lane boundary and N to the 8-sublane boundary.
    # Zero feature columns are loss-neutral; padded samples carry zero labels
    # and are masked out of the negative sums via neg_labels_t below.
    d_pad = ((d + 127) // 128) * 128
    n_pad = ((n + 7) // 8) * 8
    f_p = jnp.zeros((n_pad, d_pad), jnp.float32).at[:n, :d].set(features)
    lab_p = jnp.zeros((n_pad, c), jnp.float32).at[:n, :].set(labels)
    lab_t = jnp.transpose(lab_p)                                          # [C, N_pad]
    neg_lab_t = jnp.zeros((c, n_pad), jnp.float32).at[:, :n].set(
        jnp.transpose(1.0 - labels))                                      # padded cols = 0

    kernel = functools.partial(_wcs_loss_kernel, class_num=class_num,
                               n_valid=n, eps=eps)

    # Explicit VMEM budget: ~3 live N^2 f32 arrays + single-buffered inputs +
    # [C,N] scratch + headroom, clamped to 3/4 of physical VMEM.
    n2_bytes = 4 * n_pad * n_pad
    needed = (4 * n2_bytes
              + 4 * (n_pad * d_pad + n_pad * c + 3 * c * n_pad)
              + 4 * (c * n_pad + 8 * c)
              + (4 << 20))
    try:
        phys_vmem = int(pltpu.get_tpu_info().vmem_capacity_bytes)
    except Exception:
        phys_vmem = 64 << 20                       # conservative (v7x) fallback
    vmem_limit = int(min(max(needed, 32 << 20), (phys_vmem * 3) // 4))

    # Gridless call: single invocation, whole arrays resident in VMEM exactly
    # once (no pipeline double-buffering of the inputs).
    out = pl.pallas_call(
        kernel,
        out_shape=jax.ShapeDtypeStruct((1, 1), jnp.float32),
        in_specs=[pl.BlockSpec(memory_space=pltpu.MemorySpace.VMEM)] * 4,
        out_specs=pl.BlockSpec(memory_space=pltpu.MemorySpace.VMEM),
        scratch_shapes=[pltpu.VMEM((c, n_pad), jnp.float32),   # per-class negative sums
                        pltpu.VMEM((c, 1), jnp.float32)],      # per-class t1 terms
        compiler_params=pltpu.CompilerParams(vmem_limit_bytes=vmem_limit),
    )(f_p, lab_p, lab_t, neg_lab_t)
    return out[0, 0]


def reference_loss_np(features, labels, class_num):
    """Straight numpy port of the PyTorch forward (float64 ground truth)."""
    f = np.asarray(features, dtype=np.float64)
    lab = np.asarray(labels, dtype=np.float64)
    dist = lab @ (1.0 - lab).T + (1.0 - lab) @ lab.T
    w = np.linalg.norm(f, axis=1, keepdims=True)
    cos = (f @ f.T) / np.maximum(w @ w.T, 1e-15)
    S = np.exp(cos)
    loss = 0.0
    for i in range(class_num):
        pos_idx = np.where(lab[:, i] == 1)[0]
        if len(pos_idx) == 0:
            continue
        neg_idx = np.where(lab[:, i] != 1)[0]
        size = len(neg_idx) + 1
        pos_weight = 1.0 - dist[np.ix_(pos_idx, pos_idx)] / class_num
        neg_weight = dist[np.ix_(pos_idx, neg_idx)]
        pos_dis = S[np.ix_(pos_idx, pos_idx)] * pos_weight
        neg_dis = S[np.ix_(pos_idx, neg_idx)] * neg_weight
        denominator = neg_dis.sum(1) + pos_dis
        loss += np.mean(np.log(denominator / (pos_dis * size)))
    return loss


if __name__ == "__main__":
    N, D, C = 8, 32, 4   # batch=8, feature dim=32, class_num=4
    key = jax.random.PRNGKey(0)
    kf, kl = jax.random.split(key)
    features = jax.random.normal(kf, (N, D), dtype=jnp.float32)
    labels = jax.random.bernoulli(kl, 0.5, (N, C)).astype(jnp.float32)

    loss = weighted_cosine_similarity_loss(features, labels, C)
    loss = jax.block_until_ready(loss)

    ref = reference_loss_np(np.asarray(features), np.asarray(labels), C)
    assert np.allclose(float(loss), ref, rtol=1e-4, atol=1e-5), (float(loss), ref)
    print("KERNEL_OK")
</pallas_src>

<mosaic_0001>
module attributes {stable_mosaic.version = 11 : i64} {
  func.func @_wcs_loss_kernel(%arg0: memref<8x128xf32, #tpu.memory_space<vmem>>, %arg1: memref<8x4xf32, #tpu.memory_space<vmem>>, %arg2: memref<4x8xf32, #tpu.memory_space<vmem>>, %arg3: memref<4x8xf32, #tpu.memory_space<vmem>>, %arg4: memref<1x1xf32, #tpu.memory_space<vmem>>, %arg5: memref<4x8xf32, #tpu.memory_space<vmem>>, %arg6: memref<4x1xf32, #tpu.memory_space<vmem>>) attributes {dimension_semantics = [], scalar_prefetch = 0 : i64, scratch_operands = 2 : i64, tpu.core_type = #tpu.core_type<tc>} {
    %c0 = arith.constant 0 : index
    %c0_0 = arith.constant 0 : index
    %0 = vector.load %arg0[%c0, %c0_0] : memref<8x128xf32, #tpu.memory_space<vmem>>, vector<8x128xf32>
    %1 = arith.mulf %0, %0 : vector<8x128xf32>
    %cst = arith.constant dense<0.000000e+00> : vector<8xf32>
    %2 = vector.multi_reduction <add>, %1, %cst [1] : vector<8x128xf32> to vector<8xf32>
    %3 = vector.shape_cast %2 : vector<8xf32> to vector<8x1xf32>
    %cst_1 = arith.constant 1.000000e-30 : f32
    %4 = vector.broadcast %cst_1 : f32 to vector<8x1xf32>
    %5 = arith.maximumf %3, %4 : vector<8x1xf32>
    %6 = math.rsqrt %5 : vector<8x1xf32>
    %7 = vector.broadcast %6 : vector<8x1xf32> to vector<8x128xf32>
    %8 = arith.mulf %0, %7 : vector<8x128xf32>
    %cst_2 = arith.constant dense<0.000000e+00> : vector<8x8xf32>
    %9 = tpu.matmul %8, %8, %cst_2 {dimension_numbers = #tpu.dot_dimension_numbers<[1], [1], [0], [0], [0, 0, 1, 0], [], []>} : vector<8x128xf32>, vector<8x128xf32>, vector<8x8xf32> -> vector<8x8xf32>
    %10 = math.exp %9 : vector<8x8xf32>
    %c0_3 = arith.constant 0 : index
    %c0_4 = arith.constant 0 : index
    %11 = vector.load %arg1[%c0_3, %c0_4] : memref<8x4xf32, #tpu.memory_space<vmem>>, vector<8x4xf32>
    %c0_5 = arith.constant 0 : index
    %c0_6 = arith.constant 0 : index
    %12 = vector.load %arg2[%c0_5, %c0_6] : memref<4x8xf32, #tpu.memory_space<vmem>>, vector<4x8xf32>
    %c0_7 = arith.constant 0 : index
    %c0_8 = arith.constant 0 : index
    %13 = vector.load %arg3[%c0_7, %c0_8] : memref<4x8xf32, #tpu.memory_space<vmem>>, vector<4x8xf32>
    %cst_9 = arith.constant dense<0.000000e+00> : vector<8x8xf32>
    %14 = tpu.matmul %11, %13, %cst_9 {dimension_numbers = #tpu.dot_dimension_numbers<[1], [0], [0], [1], [0, 0, 1, 1], [], []>} : vector<8x4xf32>, vector<4x8xf32>, vector<8x8xf32> -> vector<8x8xf32>
    %cst_10 = arith.constant 1.000000e+00 : f32
    %15 = vector.broadcast %cst_10 : f32 to vector<8x4xf32>
    %16 = arith.subf %15, %11 : vector<8x4xf32>
    %cst_11 = arith.constant dense<0.000000e+00> : vector<8x8xf32>
    %17 = tpu.matmul %16, %12, %cst_11 {dimension_numbers = #tpu.dot_dimension_numbers<[1], [0], [0], [1], [0, 0, 1, 1], [], []>} : vector<8x4xf32>, vector<4x8xf32>, vector<8x8xf32> -> vector<8x8xf32>
    %18 = arith.addf %14, %17 : vector<8x8xf32>
    %19 = arith.mulf %10, %18 : vector<8x8xf32>
    %cst_12 = arith.constant dense<0.000000e+00> : vector<4x8xf32>
    %20 = tpu.matmul %13, %19, %cst_12 {dimension_numbers = #tpu.dot_dimension_numbers<[1], [0], [0], [1], [0, 0, 1, 1], [], []>} : vector<4x8xf32>, vector<8x8xf32>, vector<4x8xf32> -> vector<4x8xf32>
    %c0_13 = arith.constant 0 : index
    %c0_14 = arith.constant 0 : index
    %21 = vector.load %arg5[%c0_13, %c0_14] : memref<4x8xf32, #tpu.memory_space<vmem>>, vector<4x8xf32>
    tpu.vector_store %arg5[%c0_13, %c0_14], %20 {strides = array<i32>} : memref<4x8xf32, #tpu.memory_space<vmem>>, vector<4x8xf32>,
    %cst_15 = arith.constant 2.500000e-01 : f32
    %22 = vector.broadcast %cst_15 : f32 to vector<8x8xf32>
    %23 = arith.mulf %18, %22 : vector<8x8xf32>
    %cst_16 = arith.constant 1.000000e+00 : f32
    %24 = vector.broadcast %cst_16 : f32 to vector<8x8xf32>
    %25 = arith.subf %24, %23 : vector<8x8xf32>
    %26 = arith.mulf %10, %25 : vector<8x8xf32>
    %cst_17 = arith.constant 1.000000e-30 : f32
    %27 = vector.broadcast %cst_17 : f32 to vector<8x8xf32>
    %28 = arith.maximumf %26, %27 : vector<8x8xf32>
    %29 = math.log %28 : vector<8x8xf32>
    %cst_18 = arith.constant dense<0.000000e+00> : vector<4x8xf32>
    %30 = tpu.matmul %12, %29, %cst_18 {dimension_numbers = #tpu.dot_dimension_numbers<[1], [0], [0], [1], [0, 0, 1, 1], [], []>} : vector<4x8xf32>, vector<8x8xf32>, vector<4x8xf32> -> vector<4x8xf32>
    %31 = arith.mulf %12, %30 : vector<4x8xf32>
    %cst_19 = arith.constant dense<0.000000e+00> : vector<4xf32>
    %32 = vector.multi_reduction <add>, %31, %cst_19 [1] : vector<4x8xf32> to vector<4xf32>
    %33 = vector.shape_cast %32 : vector<4xf32> to vector<4x1xf32>
    %cst_20 = arith.constant dense<0.000000e+00> : vector<4xf32>
    %34 = vector.multi_reduction <add>, %12, %cst_20 [1] : vector<4x8xf32> to vector<4xf32>
    %35 = vector.shape_cast %34 : vector<4xf32> to vector<4x1xf32>
    %cst_21 = arith.constant 8.000000e+00 : f32
    %36 = vector.broadcast %cst_21 : f32 to vector<4x1xf32>
    %37 = arith.subf %36, %35 : vector<4x1xf32>
    %cst_22 = arith.constant 1.000000e+00 : f32
    %38 = vector.broadcast %cst_22 : f32 to vector<4x1xf32>
    %39 = arith.addf %37, %38 : vector<4x1xf32>
    %c0_i32 = arith.constant 0 : i32
    %40 = arith.index_cast %c0_i32 : i32 to index
    %c0_23 = arith.constant 0 : index
    %41 = vector.load %arg2[%40, %c0_23] : memref<4x8xf32, #tpu.memory_space<vmem>>, vector<1x8xf32>
    %42 = arith.index_cast %c0_i32 : i32 to index
    %c0_24 = arith.constant 0 : index
    %43 = vector.load %arg5[%42, %c0_24] : memref<4x8xf32, #tpu.memory_space<vmem>>, vector<1x8xf32>
    %44 = vector.broadcast %43 : vector<1x8xf32> to vector<8x8xf32>
    %45 = arith.addf %44, %26 : vector<8x8xf32>
    %cst_25 = arith.constant 1.000000e-30 : f32
    %46 = vector.broadcast %cst_25 : f32 to vector<8x8xf32>
    %47 = arith.maximumf %45, %46 : vector<8x8xf32>
    %48 = math.log %47 : vector<8x8xf32>
    %cst_26 = arith.constant dense<0.000000e+00> : vector<1x8xf32>
    %49 = tpu.matmul %41, %48, %cst_26 {dimension_numbers = #tpu.dot_dimension_numbers<[1], [0], [0], [1], [0, 0, 1, 1], [], []>} : vector<1x8xf32>, vector<8x8xf32>, vector<1x8xf32> -> vector<1x8xf32>
    %50 = arith.mulf %49, %41 : vector<1x8xf32>
    %cst_27 = arith.constant dense<0.000000e+00> : vector<1xf32>
    %51 = vector.multi_reduction <add>, %50, %cst_27 [1] : vector<1x8xf32> to vector<1xf32>
    %52 = vector.shape_cast %51 : vector<1xf32> to vector<1x1xf32>
    %53 = arith.index_cast %c0_i32 : i32 to index
    %c0_28 = arith.constant 0 : index
    %54 = vector.load %arg6[%53, %c0_28] : memref<4x1xf32, #tpu.memory_space<vmem>>, vector<1x1xf32>
    tpu.vector_store %arg6[%53, %c0_28], %52 {strides = array<i32>} : memref<4x1xf32, #tpu.memory_space<vmem>>, vector<1x1xf32>,
    %c1_i32 = arith.constant 1 : i32
    %55 = arith.index_cast %c1_i32 : i32 to index
    %c0_29 = arith.constant 0 : index
    %56 = vector.load %arg2[%55, %c0_29] : memref<4x8xf32, #tpu.memory_space<vmem>>, vector<1x8xf32>
    %57 = arith.index_cast %c1_i32 : i32 to index
    %c0_30 = arith.constant 0 : index
    %58 = vector.load %arg5[%57, %c0_30] : memref<4x8xf32, #tpu.memory_space<vmem>>, vector<1x8xf32>
    %59 = vector.broadcast %58 : vector<1x8xf32> to vector<8x8xf32>
    %60 = arith.addf %59, %26 : vector<8x8xf32>
    %cst_31 = arith.constant 1.000000e-30 : f32
    %61 = vector.broadcast %cst_31 : f32 to vector<8x8xf32>
    %62 = arith.maximumf %60, %61 : vector<8x8xf32>
    %63 = math.log %62 : vector<8x8xf32>
    %cst_32 = arith.constant dense<0.000000e+00> : vector<1x8xf32>
    %64 = tpu.matmul %56, %63, %cst_32 {dimension_numbers = #tpu.dot_dimension_numbers<[1], [0], [0], [1], [0, 0, 1, 1], [], []>} : vector<1x8xf32>, vector<8x8xf32>, vector<1x8xf32> -> vector<1x8xf32>
    %65 = arith.mulf %64, %56 : vector<1x8xf32>
    %cst_33 = arith.constant dense<0.000000e+00> : vector<1xf32>
    %66 = vector.multi_reduction <add>, %65, %cst_33 [1] : vector<1x8xf32> to vector<1xf32>
    %67 = vector.shape_cast %66 : vector<1xf32> to vector<1x1xf32>
    %68 = arith.index_cast %c1_i32 : i32 to index
    %c0_34 = arith.constant 0 : index
    %69 = vector.load %arg6[%68, %c0_34] : memref<4x1xf32, #tpu.memory_space<vmem>>, vector<1x1xf32>
    tpu.vector_store %arg6[%68, %c0_34], %67 {strides = array<i32>} : memref<4x1xf32, #tpu.memory_space<vmem>>, vector<1x1xf32>,
    %c2_i32 = arith.constant 2 : i32
    %70 = arith.index_cast %c2_i32 : i32 to index
    %c0_35 = arith.constant 0 : index
    %71 = vector.load %arg2[%70, %c0_35] : memref<4x8xf32, #tpu.memory_space<vmem>>, vector<1x8xf32>
    %72 = arith.index_cast %c2_i32 : i32 to index
    %c0_36 = arith.constant 0 : index
    %73 = vector.load %arg5[%72, %c0_36] : memref<4x8xf32, #tpu.memory_space<vmem>>, vector<1x8xf32>
    %74 = vector.broadcast %73 : vector<1x8xf32> to vector<8x8xf32>
    %75 = arith.addf %74, %26 : vector<8x8xf32>
    %cst_37 = arith.constant 1.000000e-30 : f32
    %76 = vector.broadcast %cst_37 : f32 to vector<8x8xf32>
    %77 = arith.maximumf %75, %76 : vector<8x8xf32>
    %78 = math.log %77 : vector<8x8xf32>
    %cst_38 = arith.constant dense<0.000000e+00> : vector<1x8xf32>
    %79 = tpu.matmul %71, %78, %cst_38 {dimension_numbers = #tpu.dot_dimension_numbers<[1], [0], [0], [1], [0, 0, 1, 1], [], []>} : vector<1x8xf32>, vector<8x8xf32>, vector<1x8xf32> -> vector<1x8xf32>
    %80 = arith.mulf %79, %71 : vector<1x8xf32>
    %cst_39 = arith.constant dense<0.000000e+00> : vector<1xf32>
    %81 = vector.multi_reduction <add>, %80, %cst_39 [1] : vector<1x8xf32> to vector<1xf32>
    %82 = vector.shape_cast %81 : vector<1xf32> to vector<1x1xf32>
    %83 = arith.index_cast %c2_i32 : i32 to index
    %c0_40 = arith.constant 0 : index
    %84 = vector.load %arg6[%83, %c0_40] : memref<4x1xf32, #tpu.memory_space<vmem>>, vector<1x1xf32>
    tpu.vector_store %arg6[%83, %c0_40], %82 {strides = array<i32>} : memref<4x1xf32, #tpu.memory_space<vmem>>, vector<1x1xf32>,
    %c3_i32 = arith.constant 3 : i32
    %85 = arith.index_cast %c3_i32 : i32 to index
    %c0_41 = arith.constant 0 : index
    %86 = vector.load %arg2[%85, %c0_41] : memref<4x8xf32, #tpu.memory_space<vmem>>, vector<1x8xf32>
    %87 = arith.index_cast %c3_i32 : i32 to index
    %c0_42 = arith.constant 0 : index
    %88 = vector.load %arg5[%87, %c0_42] : memref<4x8xf32, #tpu.memory_space<vmem>>, vector<1x8xf32>
    %89 = vector.broadcast %88 : vector<1x8xf32> to vector<8x8xf32>
    %90 = arith.addf %89, %26 : vector<8x8xf32>
    %cst_43 = arith.constant 1.000000e-30 : f32
    %91 = vector.broadcast %cst_43 : f32 to vector<8x8xf32>
    %92 = arith.maximumf %90, %91 : vector<8x8xf32>
    %93 = math.log %92 : vector<8x8xf32>
    %cst_44 = arith.constant dense<0.000000e+00> : vector<1x8xf32>
    %94 = tpu.matmul %86, %93, %cst_44 {dimension_numbers = #tpu.dot_dimension_numbers<[1], [0], [0], [1], [0, 0, 1, 1], [], []>} : vector<1x8xf32>, vector<8x8xf32>, vector<1x8xf32> -> vector<1x8xf32>
    %95 = arith.mulf %94, %86 : vector<1x8xf32>
    %cst_45 = arith.constant dense<0.000000e+00> : vector<1xf32>
    %96 = vector.multi_reduction <add>, %95, %cst_45 [1] : vector<1x8xf32> to vector<1xf32>
    %97 = vector.shape_cast %96 : vector<1xf32> to vector<1x1xf32>
    %98 = arith.index_cast %c3_i32 : i32 to index
    %c0_46 = arith.constant 0 : index
    %99 = vector.load %arg6[%98, %c0_46] : memref<4x1xf32, #tpu.memory_space<vmem>>, vector<1x1xf32>
    tpu.vector_store %arg6[%98, %c0_46], %97 {strides = array<i32>} : memref<4x1xf32, #tpu.memory_space<vmem>>, vector<1x1xf32>,
    %c4_i32 = arith.constant 4 : i32
    %c0_47 = arith.constant 0 : index
    %c0_48 = arith.constant 0 : index
    %100 = vector.load %arg6[%c0_47, %c0_48] : memref<4x1xf32, #tpu.memory_space<vmem>>, vector<4x1xf32>
    %101 = arith.mulf %35, %35 : vector<4x1xf32>
    %cst_49 = arith.constant 1.000000e+00 : f32
    %102 = vector.broadcast %cst_49 : f32 to vector<4x1xf32>
    %103 = arith.maximumf %101, %102 : vector<4x1xf32>
    %cst_50 = arith.constant 0.000000e+00 : f32
    %104 = vector.broadcast %cst_50 : f32 to vector<4x1xf32>
    %105 = arith.cmpf ogt, %35, %104 : vector<4x1xf32>
    %106 = arith.subf %100, %33 : vector<4x1xf32>
    %107 = arith.divf %106, %103 : vector<4x1xf32>
    %108 = math.log %39 : vector<4x1xf32>
    %109 = arith.subf %107, %108 : vector<4x1xf32>
    %cst_51 = arith.constant 0.000000e+00 : f32
    %110 = vector.broadcast %cst_51 : f32 to vector<4x1xf32>
    %111 = arith.select %105, %109, %110 : vector<4x1xi1>, vector<4x1xf32>
    %112 = vector.shape_cast %111 : vector<4x1xf32> to vector<1x4x1xf32>
    %cst_52 = arith.constant dense<0.000000e+00> : vector<1xf32>
    %113 = vector.multi_reduction <add>, %112, %cst_52 [1, 2] : vector<1x4x1xf32> to vector<1xf32>
    %114 = vector.shape_cast %113 : vector<1xf32> to vector<1x1x1xf32>
    %115 = vector.extract %114[0, 0, 0] : f32 from vector<1x1x1xf32>
    %116 = vector.broadcast %115 : f32 to vector<1x1xf32>
    %c0_53 = arith.constant 0 : index
    %c0_54 = arith.constant 0 : index
    %117 = vector.load %arg4[%c0_53, %c0_54] : memref<1x1xf32, #tpu.memory_space<vmem>>, vector<1x1xf32>
    tpu.vector_store %arg4[%c0_53, %c0_54], %116 {strides = array<i32>} : memref<1x1xf32, #tpu.memory_space<vmem>>, vector<1x1xf32>,
    return
  }
}

</mosaic_0001>

<bundles_post_ra>
// kernel: tpu_custom_call.1
= control target key start
LH: loop header
LB: loop body
LE: loop exit
PB: predicated region body
PF: predicated region fallthrough
CT: control target
= control target key end

     0   :  { %9 = vsyncpa [#allocation5], 0  ;;  %s549_s0 = inlined_call_operand.vmem [shape: f32[8,128], index: 0, kind: input, shape index: {}]   ;;  %s550_s1 = inlined_call_operand.vmem [shape: f32[8,4], index: 1, kind: input, shape index: {}]   ;;  %s551_s2 = inlined_call_operand.vmem [shape: f32[4,8], index: 2, kind: input, shape index: {}]   ;;  %s552_s3 = inlined_call_operand.hbm [shape: f32[4,8], index: 3, kind: input, shape index: {}]   ;;  %s553_s4 = inlined_call_operand.hbm [shape: f32[1,1], index: 4, kind: output, shape index: {}]  }
   0x1   :  { %10 = vsyncpa [#allocation6], 0  ;;  %s22_s17 = sshll.u32 %s552_s3, 4  ;;  %s475_s18 = smov [#allocation4]   ;;  %s23_s17 = int_to_ptr.hbm [resolvable:$true] %s22_s17 }
   0x2   :  { %s24_s19 = sshll.u32 %s475_s18, 4  ;;  %s25_s19 = int_to_ptr.vmem [resolvable:$true] %s24_s19 }
   0x3   :  { %27 = dma.hbm_to_vmem [thread:$0]  %s23_s17, 64, %s25_s19, [#allocation5]  }
   0x4   :  { %471 = dma.done.wait [#allocation5], 64  }
   0x5   :  { %472 = vsyncadd [#allocation5], 4294967232  ;;  %v32_v0 = vld [vmem:[%s549_s0] sm:$0xff]  ;;  %v72_v2 = vld [vmem:[#allocation4] sm:$0xf]  ;;  %vm78_vm0 = vcmask 1043456  }
   0x6   :  { %v33_v1 = vmul.f32 %v32_v0, %v32_v0  ;;  %389 = vmatpush.msk.msra.mxu2 %vm78_vm0, %v72_v2  ;;  %v70_v3 = vld [vmem:[%s550_s1] sm:$0xff]  ;;  %vm74_vm1 = vcmask 31744   ;;  %vm129_vm5 = vcmask 64512   ;;  %vm152_vm6 = vcmask 60416   ;;  %s377_s6 = sshll.u32 %s553_s4, 4  ;;  %s476_s7 = smov [#allocation7]   ;;  %s378_s6 = int_to_ptr.hbm [resolvable:$true] %s377_s6 }
   0x7   :  { %390 = vmatmul.msk.f32.vlgmr.msra.gmra.mxu2 %vm74_vm1, %v70_v3  ;;  %v73_v4 = vsub.f32 1.0, %v70_v3  ;;  %v514_v5 = vld [vmem:[%s551_s2] sm:$0xf]  ;;  %vm222_vm7 = vcmask 57344   ;;  %vm226_vm8 = vcmask 0   ;;  %vm357_vm13 = vcmask 3072  }
   0x8   :  { %34 = vadd.xlane.f32.xlu0 %v33_v1  ;;  %387 = vmatpush.msk.msra.mxu1 %vm78_vm0, %v514_v5  ;;  %v186_v29 = vsel %vm152_vm6, %v514_v5, 0.0  ;;  %v191_v46 = vld [vmem:[%s551_s2] sm:$0x1]  ;;  %v228_v49 = vld [vmem:[%s551_s2 + $0x1] sm:$0x1]  ;;  %s375_s8 = sshll.u32 %s476_s7, 4  ;;  %s376_s8 = int_to_ptr.vmem [resolvable:$true] %s375_s8 }
   0x9   :  { %388 = vmatmul.msk.f32.vlgmr.msra.gmra.mxu1 %vm74_vm1, %v73_v4  ;;  %v263_v52 = vld [vmem:[%s551_s2 + $0x2] sm:$0x1]  ;;  %v298_v54 = vld [vmem:[%s551_s2 + $0x3] sm:$0x1] }
  0x10   :  { %187 = vadd.xlane.f32.xlu0 %v186_v29 }
  0x7b   :  { %v35_v6 = vpop.xlane.xlu0 %34 }
  0x7c   :  { %v36_v7 = vmax.f32 %v35_v6, 1e-30 }
  0x7e   :  { %405 = vrsqrt.f32 %v36_v7  ;;  %vm43_vm3 = vweird.f32 %v36_v7 }
  0x84   :  { %v406_v8 = vpop.eup %405 }
  0x85   :  { %v38_v9 = vmul.f32 %v406_v8, %v36_v7  ;;  %vm44_vm2 = vweird.f32 %v406_v8 }
  0x86   :  { %vm45_vm4 = vmor %vm43_vm3, %vm44_vm2  ;;  %v99_v16 = vpop.f32.mrf.mxu1 }
  0x87   :  { %v39_v10 = vmul.f32 %v406_v8, %v38_v9 }
  0x89   :  { %v40_v11 = vmul.f32 0.5, %v39_v10 }
  0x8a   :  { %v125_v17 = vpop.f32.mrf.mxu2 }
  0x8b   :  { %v41_v12 = vsub.f32 1.5, %v40_v11  ;;  %v126_v18 = vadd.f32 %v125_v17, %v99_v16 }
  0x8d   :  { %v42_v13 = vmul.f32 %v406_v8, %v41_v12  ;;  %v154_v21 = vmul.f32 0.25, %v126_v18 }
  0x8f   :  { %v46_v14 = vsel %vm45_vm4, %v406_v8, %v42_v13  ;;  %v155_v22 = vsub.f32 1.0, %v154_v21 }
  0x90   :  { %v47_v15 = vmul.f32 %v46_v14, %v32_v0 }
  0x92   :  { %63 = vmatpush.xpose.msra.mxu0 %v47_v15 }
  0x95   :  { %64 = vmatmul.f32.vlgmr.msra.gmra.mxu0 %v47_v15 }
 0x112   :  { %v65_v19 = vpop.f32.mrf.mxu0 }
 0x113   :  { %v68_v20 = vmul.f32 1.442695, %v65_v19 }
 0x115   :  { %407 = vpow2.f32 %v68_v20 }
 0x11b   :  { %v408_v23 = vpop.eup %407 }
 0x11c   :  { %v156_v24 = vmul.f32 %v408_v23, %v155_v22  ;;  %v128_v25 = vmul.f32 %v408_v23, %v126_v18 }
 0x11e   :  { %147 = vmatpush.msra.mxu3 %v128_v25  ;;  %v157_v26 = vmax.f32 %v156_v24, 1e-30 }
 0x11f   :  { %391 = vmatmul.msk.f32.vlgmr.msra.gmra.mxu3 %vm129_vm5, %v72_v2 }
 0x120   :  { %409 = vlog2.f32 %v157_v26 }
 0x126   :  { %v410_v27 = vpop.eup %409 }
 0x127   :  { %v159_v28 = vmul.f32 0.6931472, %v410_v27 }
 0x129   :  { %177 = vmatpush.msrb.mxu1 %v159_v28 }
 0x12a   :  { %392 = vmatmul.msk.f32.vlgmr.msrb.gmra.mxu1 %vm129_vm5, %v514_v5 }
 0x1a2   :  { %v149_v30 = vpop.f32.mrf.mxu3 }
 0x1a3   :  { %153 = vst.msk [vmem:[#allocation2] sm:$0xf] %vm152_vm6, %v149_v30 }
 0x1a7   :  { %v179_v55 = vpop.f32.mrf.mxu1 }
 0x1a8   :  { %v182_v56 = vmul.f32 %v179_v55, %v514_v5  ;;  %v188_v5 = vpop.xlane.xlu0 %187 }
 0x1a9   :  { %v334_v7 = vmul.f32 %v188_v5, %v188_v5  ;;  %v189_v13 = vsub.f32 8.0, %v188_v5  ;;  %vm336_vm14 = vcmp.gt.f32.partialorder %v188_v5, 0.0 }
 0x1aa   :  { %v401_v31 = vld [vmem:[#allocation2] ss:$0 sm:$0xff]  ;;  %v402_v32 = vld [vmem:[#allocation2 + $0x1] ss:$0 sm:$0xff]  ;;  %v403_v33 = vld [vmem:[#allocation2 + $0x2] ss:$0 sm:$0xff] }
 0x1ab   :  { %v194_v34 = vadd.f32 %v401_v31, %v156_v24  ;;  %v404_v35 = vld [vmem:[#allocation2 + $0x3] ss:$0 sm:$0xff]  ;;  %v231_v36 = vadd.f32 %v402_v32, %v156_v24  ;;  %v266_v37 = vadd.f32 %v403_v33, %v156_v24  ;;  %v183_v57 = vsel %vm152_vm6, %v182_v56, 0.0 }
 0x1ac   :  { %v301_v39 = vadd.f32 %v404_v35, %v156_v24  ;;  %184 = vadd.xlane.f32.xlu0 %v183_v57  ;;  %v335_v8 = vmax.f32 %v334_v7, 1.0  ;;  %v190_v16 = vadd.f32 1.0, %v189_v13 }
 0x1ad   :  { %v195_v38 = vmax.f32 %v194_v34, 1e-30  ;;  %v232_v40 = vmax.f32 %v231_v36, 1e-30  ;;  %v267_v41 = vmax.f32 %v266_v37, 1e-30 }
 0x1ae   :  { %v302_v42 = vmax.f32 %v301_v39, 1e-30  ;;  %vm343_vm9 = vweird.f32 %v335_v8  ;;  %v349_v19 = vand.u32 2147483648, %v335_v8  ;;  %v347_v21 = vand.u32 2147483647, %v335_v8 }
 0x1af   :  { %411 = vlog2.f32 %v195_v38 }
 0x1b0   :  { %413 = vlog2.f32 %v232_v40  ;;  %v350_v22 = vor.u32 1.1754944e-38, %v349_v19  ;;  %vm348_vm12 = vcmp.eq.f32.partialorder %v347_v21, 8.507059e+37 }
 0x1b1   :  { %415 = vlog2.f32 %v267_v41 }
 0x1b2   :  { %417 = vlog2.f32 %v302_v42 }
 0x1b3   :  { %419 = vrcp.f32 %v335_v8 }
 0x1b4   :  { %421 = vlog2.f32 %v190_v16 }
 0x1b5   :  { %v412_v43 = vpop.eup %411 }
 0x1b6   :  { %v414_v44 = vpop.eup %413  ;;  %v197_v45 = vmul.f32 0.6931472, %v412_v43 }
 0x1b7   :  { %v416_v47 = vpop.eup %415  ;;  %v234_v48 = vmul.f32 0.6931472, %v414_v44 }
 0x1b8   :  { %v418_v50 = vpop.eup %417  ;;  %216 = vmatpush.msrb.mxu2 %v197_v45  ;;  %v269_v51 = vmul.f32 0.6931472, %v416_v47 }
 0x1b9   :  { %253 = vmatpush.msrb.mxu3 %v234_v48  ;;  %v304_v53 = vmul.f32 0.6931472, %v418_v50  ;;  %393 = vmatmul.msk.f32.vlgmr.msrb.gmra.mxu2 %vm129_vm5, %v191_v46  ;;  %v420_v9 = vpop.eup %419 }
 0x1ba   :  { %288 = vmatpush.msrb.mxu0 %v269_v51  ;;  %394 = vmatmul.msk.f32.vlgmr.msrb.gmra.mxu3 %vm129_vm5, %v228_v49  ;;  %v339_v11 = vmul.f32 %v420_v9, %v335_v8  ;;  %vm344_vm10 = vweird.f32 %v420_v9  ;;  %v422_v24 = vpop.eup %421 }
 0x1bb   :  { %323 = vmatpush.msra.mxu1 %v304_v53  ;;  %395 = vmatmul.msk.f32.vlgmr.msrb.gmra.mxu0 %vm129_vm5, %v263_v52  ;;  %vm345_vm11 = vmor %vm343_vm9, %vm344_vm10  ;;  %v354_v30 = vmul.f32 0.6931472, %v422_v24 }
 0x1bc   :  { %396 = vmatmul.msk.f32.vlgmr.msra.gmra.mxu1 %vm129_vm5, %v298_v54  ;;  %v340_v14 = vsub.f32 1.0, %v339_v11 }
 0x1be   :  { %v341_v17 = vmul.f32 %v420_v9, %v340_v14 }
 0x1c0   :  { %v342_v20 = vadd.f32 %v420_v9, %v341_v17 }
 0x1c2   :  { %v346_v23 = vsel %vm345_vm11, %v420_v9, %v342_v20 }
 0x1c3   :  { %v351_v28 = vsel %vm348_vm12, %v350_v22, %v346_v23 }
 0x21f   :  { %v185_v25 = vpop.xlane.xlu0 %184 }
 0x238   :  { %v290_v58 = vpop.f32.mrf.mxu0 }
 0x239   :  { %v293_v59 = vmul.f32 %v290_v58, %v263_v52  ;;  %v325_v60 = vpop.f32.mrf.mxu1 }
 0x23a   :  { %v328_v0 = vmul.f32 %v325_v60, %v298_v54 }
 0x23b   :  { %v294_v61 = vsel %vm222_vm7, %v293_v59, 0.0 }
 0x23c   :  { %v218_v62 = vpop.f32.mrf.mxu2  ;;  %295 = vadd.xlane.f32.xlu2 %v294_v61  ;;  %v329_v4 = vsel %vm222_vm7, %v328_v0, 0.0 }
 0x23d   :  { %v221_v63 = vmul.f32 %v218_v62, %v191_v46  ;;  %v255_v1 = vpop.f32.mrf.mxu3 }
 0x23e   :  { %v258_v3 = vmul.f32 %v255_v1, %v228_v49 }
 0x23f   :  { %v223_v2 = vsel %vm222_vm7, %v221_v63, 0.0 }
 0x240   :  { %224 = vadd.xlane.f32.xlu1 %v223_v2  ;;  %v259_v6 = vsel %vm222_vm7, %v258_v3, 0.0 }
 0x244   :  { %330 = vadd.xlane.f32.xlu2 %v329_v4 }
 0x248   :  { %260 = vadd.xlane.f32.xlu1 %v259_v6 }
 0x2af   :  { %v296_v10 = vpop.xlane.xlu2 %295 }
 0x2b0   :  { %297 = vst.msk [vmem:[#allocation3 + $0x2] sm:$0x1] %vm226_vm8, %v296_v10 }
 0x2b3   :  { %v225_v12 = vpop.xlane.xlu1 %224 }
 0x2b4   :  { %227 = vst.msk [vmem:[#allocation3] sm:$0x1] %vm226_vm8, %v225_v12 }
 0x2b7   :  { %v331_v15 = vpop.xlane.xlu2 %330 }
 0x2b8   :  { %332 = vst.msk [vmem:[#allocation3 + $0x3] sm:$0x1] %vm226_vm8, %v331_v15 }
 0x2bb   :  { %v261_v18 = vpop.xlane.xlu1 %260 }
 0x2bc   :  { %262 = vst.msk [vmem:[#allocation3 + $0x1] sm:$0x1] %vm226_vm8, %v261_v18 }
 0x2c3   :  { %v333_v26 = vld [vmem:[#allocation3] sm:$0xf] }
 0x2c4   :  { %v337_v27 = vsub.f32 %v333_v26, %v185_v25 }
 0x2c6   :  { %v352_v29 = vmul.f32 %v351_v28, %v337_v27 }
 0x2c8   :  { %v355_v31 = vsub.f32 %v352_v29, %v354_v30 }
 0x2ca   :  { %v356_v32 = vsel %vm336_vm14, %v355_v31, 0.0 }
 0x2cb   :  { %v358_v33 = vsel %vm357_vm13, %v356_v32, 0.0 }
 0x2cc   :  { %359 = vadd.xlane.f32.xlu1 %v358_v33 }
 0x33f   :  { %v360_v34 = vpop.xlane.xlu1 %359 }
 0x340   :  { %v361_v35 = vrot.slane %v360_v34, 4 }
 0x342   :  { %v362_v36 = vadd.f32 %v361_v35, %v360_v34 }
 0x344   :  { %v363_v37 = vrot.slane %v362_v36, 2 }
 0x346   :  { %v364_v38 = vadd.f32 %v363_v37, %v362_v36 }
 0x348   :  { %v365_v39 = vrot.slane %v364_v38, 1 }
 0x34a   :  { %v366_v40 = vadd.f32 %v365_v39, %v364_v38 }
 0x34c   :  { %397 = vpush %v366_v40 }
 0x37d   :  { %s398_s9 = spop %397 }
 0x37e   :  { %v368_v41 = vstv %s398_s9 }
 0x37f   :  { %369 = vst.msk [vmem:[#allocation7] sm:$0x1] %vm226_vm8, %v368_v41 }
 0x380   :  { %380 = dma.vmem_to_hbm [thread:$0]  %s376_s8, 16, %s378_s6, [#allocation6]  }
 0x381   :  { %473 = dma.done.wait [#allocation6], 16  }
 0x382   :  { %474 = vsyncadd [#allocation6], 4294967280 }
 0x383   :  { %385 = vsyncpa [#allocation5], 1 }
 0x384   :  { %386 = vsyncpa [#allocation6], 1 }

</bundles_post_ra>
